<compile_context>
chip_gen: v7x
topology: tpu7x:2x2x1
jax: 0.10.0
libtpu: 0.0.40
codegen_flags: <defaults>
</compile_context>

<pallas_src>
import math

import jax
import jax.numpy as jnp
from jax.experimental import pallas as pl
from jax.experimental.pallas import tpu as pltpu

_TARGET_BLOCK_BYTES = 4 * 1024 * 1024       # ~4 MiB per block
_VMEM_LIMIT_BYTES = 48 * 1024 * 1024        # explicit scoped-VMEM budget


def _negation_kernel(x_ref, o_ref):
    # Elementwise 1 - x on the VPU. Dtype-matched constant avoids promotion
    # for low-precision float / integer inputs.
    one = jnp.array(1, dtype=x_ref.dtype)
    o_ref[...] = one - x_ref[...]


def _choose_block_rows(rows: int, cols: int, itemsize: int) -> int:
    """Pick a row-block size: sublane-aligned, ~4 MiB, even split, >=2 blocks."""
    # Sub-32-bit dtypes pack along sublanes: 8 for 32-bit, 16 for bf16, 32 for int8.
    sub = max(8, 32 // max(1, itemsize))
    if rows <= sub:
        return rows  # single full-extent block is always legal

    # Target ~4 MiB of rows, floored to the sublane multiple.
    target = max(sub, _TARGET_BLOCK_BYTES // (cols * itemsize))
    target = max(sub, (target // sub) * sub)

    # At least 2 blocks so both v7x TensorCores stream; then split rows as
    # evenly as possible and round up to the sublane multiple (avoids a
    # ragged, masked final tile whenever rows allows it).
    nblocks = max(2, pl.cdiv(rows, target))
    block_rows = pl.cdiv(rows, nblocks)
    block_rows = pl.cdiv(block_rows, sub) * sub
    return min(block_rows, rows)


def _negate_2d(x2d: jax.Array) -> jax.Array:
    """Runs the streaming kernel on a (rows, cols) slab."""
    rows, cols = x2d.shape
    itemsize = jnp.dtype(x2d.dtype).itemsize
    block_rows = _choose_block_rows(rows, cols, itemsize)

    grid = (pl.cdiv(rows, block_rows),)
    return pl.pallas_call(
        _negation_kernel,
        out_shape=jax.ShapeDtypeStruct((rows, cols), x2d.dtype),
        grid=grid,
        in_specs=[pl.BlockSpec((block_rows, cols), lambda i: (i, 0))],
        out_specs=pl.BlockSpec((block_rows, cols), lambda i: (i, 0)),
        compiler_params=pltpu.CompilerParams(
            dimension_semantics=("parallel",),
            vmem_limit_bytes=_VMEM_LIMIT_BYTES,
        ),
    )(x2d)


def negation(embeddings: jax.Array) -> jax.Array:
    """Computes 1 - embeddings with a Pallas TPU kernel.

    embeddings: (num_sets, batch, dim) — any shape works; op is elementwise.
    returns:    same shape/dtype as the input (input is NOT consumed).
    """
    shape = embeddings.shape
    total = math.prod(shape)
    if total == 0:
        return embeddings

    # Prefer the widest lane-dense column width (multiple of 128) dividing
    # the total element count -> unmasked lane-dense stores.
    cols = None
    for c in (2048, 1024, 512, 256, 128):
        if total % c == 0:
            cols = c
            break

    if cols is None:
        # Single-pass fallback: keep the natural last dim as a full-extent
        # block dim (legal regardless of 128-divisibility; stores may be
        # masked, but no extra pad/slice HBM passes).
        cols = shape[-1] if len(shape) >= 2 and shape[-1] > 0 else total
        if total % cols != 0:
            cols = total  # degenerate case: one long row

    rows = total // cols
    out2d = _negate_2d(embeddings.reshape(rows, cols))
    return out2d.reshape(shape)


# TODO(synk): the torch module builds a regularizer in __init__ via
# get_regularizer, but it is never applied in forward(); nothing to translate.


if __name__ == "__main__":
    key = jax.random.PRNGKey(0)

    # (# of sets, batch, dim) — small shape consistent with the module.
    num_sets, batch, dim = 2, 8, 128
    k1, k2 = jax.random.split(key)
    embeddings = jax.random.uniform(k1, (num_sets, batch, dim), dtype=jnp.float32)

    ref = 1.0 - embeddings
    out = jax.block_until_ready(negation(embeddings))
    assert out.shape == (num_sets, batch, dim)
    assert out.dtype == jnp.float32
    assert jnp.allclose(out, ref, atol=1e-6), "mismatch vs reference (aligned path)"

    # Exercise the non-128-aligned fallback path too.
    odd = jax.random.uniform(k2, (3, 5, 50), dtype=jnp.float32)
    odd_out = jax.block_until_ready(negation(odd))
    assert odd_out.shape == (3, 5, 50)
    assert jnp.allclose(odd_out, 1.0 - odd, atol=1e-6), "mismatch vs reference (fallback path)"

    print("KERNEL_OK")
</pallas_src>

<mosaic_0001>
module attributes {stable_mosaic.version = 11 : i64} {
  func.func @_negation_kernel(%arg0: i32, %arg1: memref<1x2048xf32, #tpu.memory_space<vmem>>, %arg2: memref<1x2048xf32, #tpu.memory_space<vmem>>) attributes {dimension_semantics = [#tpu.dimension_semantics<parallel>], iteration_bounds = array<i64: 1>, scalar_prefetch = 0 : i64, scratch_operands = 0 : i64, tpu.core_type = #tpu.core_type<tc>, window_params = [{transform_indices = @transform_0, window_bounds = array<i64: 1, 2048>}, {transform_indices = @transform_1, window_bounds = array<i64: 1, 2048>}]} {
    %c0 = arith.constant 0 : index
    %c0_0 = arith.constant 0 : index
    %0 = vector.load %arg1[%c0, %c0_0] : memref<1x2048xf32, #tpu.memory_space<vmem>>, vector<1x2048xf32>
    %cst = arith.constant 1.000000e+00 : f32
    %1 = vector.broadcast %cst : f32 to vector<1x2048xf32>
    %2 = arith.subf %1, %0 : vector<1x2048xf32>
    %c0_1 = arith.constant 0 : index
    %c0_2 = arith.constant 0 : index
    %3 = vector.load %arg2[%c0_1, %c0_2] : memref<1x2048xf32, #tpu.memory_space<vmem>>, vector<1x2048xf32>
    tpu.vector_store %arg2[%c0_1, %c0_2], %2 {strides = array<i32>} : memref<1x2048xf32, #tpu.memory_space<vmem>>, vector<1x2048xf32>,
    return
  }
  func.func @transform_0(%arg0: i32) -> (i32, i32) {
    %c0_i32 = arith.constant 0 : i32
    %c0_i32_0 = arith.constant 0 : i32
    return %arg0, %c0_i32 : i32, i32
  }
  func.func @transform_1(%arg0: i32) -> (i32, i32) {
    %c0_i32 = arith.constant 0 : i32
    %c0_i32_0 = arith.constant 0 : i32
    return %arg0, %c0_i32 : i32, i32
  }
}

</mosaic_0001>

<bundles_post_ra>
// kernel: tpu_custom_call.1
= control target key start
LH: loop header
LB: loop body
LE: loop exit
PB: predicated region body
PF: predicated region fallthrough
CT: control target
= control target key end

     0   :  { %6 = vsyncpa [#allocation3], 0  ;;  %s128_s0 = inlined_call_operand.hbm [shape: f32[1,2048], index: 0, kind: input, shape index: {}]   ;;  %s129_s1 = inlined_call_operand.hbm [shape: f32[1,2048], index: 1, kind: output, shape index: {}]  }
   0x1   :  { %7 = vsyncpa [#allocation4], 0  ;;  %s92_s6 = smov [#allocation2]   ;;  %s44_s10 = scalar_lea.hbm %s128_s0, 256 }
   0x2   :  { %s14_s7 = sshll.u32 %s92_s6, 4  ;;  %p45_p0 = scmp.ne.s32.totalorder %s128_s0, %s44_s10  ;;  %s15_s7 = int_to_ptr.vmem [resolvable:$true] %s14_s7 }
   0x3   :  { %p48_p1 = scmp.lt.u32.totalorder %s44_s10, %s128_s0 }
   0x5   :  { %p50_p2 = pnand %p48_p1, %p45_p0 }
   0x7   :  { %53 = shalt.err (!%p50_p2)
}
   0x8   :  { %s54_s15 = scalar_lea.vmem %s15_s7, 256  ;;  %p59_p4 = scmp.lt.s32.totalorder %s15_s7, %s15_s7 }
   0x9   :  { %p55_p3 = scmp.ne.s32.totalorder %s15_s7, %s54_s15  ;;  %p60_p5 = scmp.lt.s32.totalorder %s54_s15, %s54_s15 }
   0xb   :  { %p61_p6 = por %p60_p5, %p59_p4 }
   0xd   :  { %p62_p7 = pnand %p61_p6, %p55_p3 }
   0xf   :  { %65 = shalt.err (!%p62_p7)
}
  0x10   :  { %17 = dma.hbm_to_vmem [thread:$0]  %s128_s0, 256, %s15_s7, [#allocation3]  }
  0x11   :  { %88 = dma.done.wait [#allocation3], 256  }
  0x12   :  { %89 = vsyncadd [#allocation3], 4294967040  ;;  %s93_s18 = smov [#allocation5]   ;;  %v21_v0 = vld [vmem:[#allocation2] sm:$0xff]  ;;  %v22_v1 = vld [vmem:[#allocation2 + $0x8] sm:$0xff] }
  0x13   :  { %s33_s19 = sshll.u32 %s93_s18, 4  ;;  %v23_v2 = vsub.f32 1.0, %v21_v0  ;;  %v24_v3 = vsub.f32 1.0, %v22_v1  ;;  %s34_s19 = int_to_ptr.vmem [resolvable:$true] %s33_s19 }
  0x14   :  { %s66_s20 = scalar_lea.vmem %s34_s19, 256  ;;  %p71_p9 = scmp.lt.s32.totalorder %s34_s19, %s34_s19 }
  0x15   :  { %25 = vst [vmem:[#allocation5] sm:$0xff] %v23_v2  ;;  %26 = vst [vmem:[#allocation5 + $0x8] sm:$0xff] %v24_v3  ;;  %p67_p8 = scmp.ne.s32.totalorder %s34_s19, %s66_s20  ;;  %p72_p10 = scmp.lt.s32.totalorder %s66_s20, %s66_s20 }
  0x17   :  { %p73_p11 = por %p72_p10, %p71_p9 }
  0x19   :  { %p74_p12 = pnand %p73_p11, %p67_p8 }
  0x1b   :  { %77 = shalt.err (!%p74_p12)
}
  0x1c   :  { %s78_s22 = scalar_lea.hbm %s129_s1, 256 }
  0x1d   :  { %p79_p13 = scmp.ne.s32.totalorder %s129_s1, %s78_s22  ;;  %p82_p0 = scmp.lt.u32.totalorder %s78_s22, %s129_s1 }
  0x1f   :  { %p84_p1 = pnand %p82_p0, %p79_p13 }
  0x21   :  { %87 = shalt.err (!%p84_p1)
}
  0x22   :  { %36 = dma.vmem_to_hbm [thread:$0]  %s34_s19, 256, %s129_s1, [#allocation4]  }
  0x23   :  { %90 = dma.done.wait [#allocation4], 256  }
  0x24   :  { %91 = vsyncadd [#allocation4], 4294967040 }
  0x25   :  { %40 = vsyncpa [#allocation3], 1 }
  0x26   :  { %41 = vsyncpa [#allocation4], 1 }

</bundles_post_ra>
